<compile_context>
chip_gen: v7x
topology: tpu7x:2x2x1
jax: 0.10.0
libtpu: 0.0.40
codegen_flags: <defaults>
</compile_context>

<pallas_src>
import functools

import jax
import jax.numpy as jnp
from jax.experimental import pallas as pl
from jax.experimental.pallas import tpu as pltpu

LANE = 128      # vreg lane width: last dims should be multiples of 128
SUBLANE = 8     # sublane granularity for row tiles
ROW_SUB = 128   # in-kernel row sub-tile: caps the live f32 hidden activation


def _round_up(x, m):
    return (x + m - 1) // m * m


def _row_splits(tm, sub=ROW_SUB):
    """Static (offset, size) row sub-tiles covering [0, tm)."""
    splits, r = [], 0
    while r < tm:
        s = min(sub, tm - r)
        splits.append((r, s))
        r += s
    return tuple(splits)


def _pick_rows_tiling(rows, tm_target):
    """Choose (row_tile, grid_steps).

    * tiny inputs -> one full-extent block (always a legal block shape)
    * otherwise   -> >= 2 steps (both v7x TensorCores get work) of a
      sublane-aligned tile balanced with cdiv; the last grid step may be a
      partial block whose out-of-range rows Pallas masks on writeback.
    """
    if rows < 16:
        return rows, 1
    steps = max(pl.cdiv(rows, tm_target), 2)
    tm = _round_up(pl.cdiv(rows, steps), SUBLANE)
    return tm, pl.cdiv(rows, tm)


def _mlp_kernel(x_ref, w1_ref, b1_ref, w2_ref, b2_ref, o_ref, *, row_splits):
    # x_ref : (tm, Kin)  caller dtype   w1_ref: (Kin, Kmid) bf16   b1_ref: (1, Kmid) f32
    # w2_ref: (Kmid, Kout) bf16         b2_ref: (1, Kout)  f32     o_ref : (tm, Kout) caller dtype
    w1 = w1_ref[...]
    w2 = w2_ref[...]
    b1 = b1_ref[...]
    b2 = b2_ref[...]
    # Static row sub-tiling keeps the live f32 hidden tile to <= ROW_SUB rows so
    # large row tiles never spill the vreg file / steal vld-vst slots.
    for r, s in row_splits:
        x = x_ref[r:r + s, :].astype(jnp.bfloat16)              # MXU operands in bf16
        h = jnp.dot(x, w1, preferred_element_type=jnp.float32)  # linear1 (f32 acc)
        h = jnp.maximum(h + b1, 0.0)                            # bias + ReLU on VPU (f32)
        # dropout_p = 0.0 -> drop1 / drop2 are identities.
        y = jnp.dot(h.astype(jnp.bfloat16), w2,
                    preferred_element_type=jnp.float32)         # linear2 (f32 acc)
        o_ref[r:r + s, :] = (y + b2).astype(o_ref.dtype)


def mlp_forward(x, w1, b1, w2, b2, *, tm_target=1024,
                vmem_cap_bytes=48 * 1024 * 1024):
    """y = relu(x @ w1 + b1) @ w2 + b2  (dropout_p = 0).

    x : (..., in_feat)      w1: (in_feat, mid)   b1: (mid,)
    w2: (mid, out_feat)     b2: (out_feat,)      returns (..., out_feat) in x.dtype
    """
    f32, bf16 = jnp.float32, jnp.bfloat16
    lead = x.shape[:-1]
    in_feat = x.shape[-1]
    mid = w1.shape[1]
    out_feat = w2.shape[1]
    assert w1.shape == (in_feat, mid) and b1.shape == (mid,)
    assert w2.shape == (mid, out_feat) and b2.shape == (out_feat,)

    x2 = x.reshape(-1, in_feat)
    M = x2.shape[0]

    # ---- Token lane-packing (main path for this module: in_feat = 32) -------
    # Pack P = 128 // in_feat tokens per row with block-diagonal weights so all
    # 128 lanes of every DMA / store carry real data.  The reshape of x is free
    # (row-major); only the tiny weights are replicated (precompute once per
    # model in a real deployment so they constant-fold under jit).
    P = LANE // in_feat if (0 < in_feat < LANE and LANE % in_feat == 0) else 1
    pack = P > 1 and (P * mid) % LANE == 0 and (P * out_feat) % LANE == 0

    token_padded = False
    if pack:
        m_pack = _round_up(M, P)
        if m_pack != M:                         # at most P-1 padded (zero) tokens
            x2 = jnp.zeros((m_pack, in_feat), x2.dtype).at[:M].set(x2)
            token_padded = True
        rows = m_pack // P
        xk = x2.reshape(rows, P * in_feat)      # free reshape, no extra HBM pass
        eye = jnp.eye(P, dtype=f32)
        w1k = jnp.kron(eye, w1.astype(f32)).astype(bf16)   # (P*in,  P*mid) block-diag
        w2k = jnp.kron(eye, w2.astype(f32)).astype(bf16)   # (P*mid, P*out) block-diag
        b1k = jnp.tile(b1.astype(f32), P).reshape(1, -1)
        b2k = jnp.tile(b2.astype(f32), P).reshape(1, -1)
        kin, kmid, kout = P * in_feat, P * mid, P * out_feat
    else:
        # Fallback: zero-pad feature dims to multiples of 128 (not 256 -- the
        # kernel is HBM-bound, wider MXU occupancy buys nothing).  Exactness
        # invariant: padded b1/b2 lanes are 0 and ReLU(0)=0, and w2's padded
        # rows are 0, so padded lanes never leak into real outputs.
        kin = _round_up(in_feat, LANE)
        kmid = _round_up(mid, LANE)
        kout = _round_up(out_feat, LANE)
        rows = M
        if kin != in_feat:
            xk = jnp.zeros((M, kin), x2.dtype).at[:, :in_feat].set(x2)
        else:
            xk = x2

        def pad2(a, r, c, dt):
            a = a.astype(dt)
            if a.shape == (r, c):
                return a
            return jnp.zeros((r, c), dt).at[:a.shape[0], :a.shape[1]].set(a)

        w1k = pad2(w1, kin, kmid, bf16)
        w2k = pad2(w2, kmid, kout, bf16)
        b1k = pad2(b1.reshape(1, -1), 1, kmid, f32)
        b2k = pad2(b2.reshape(1, -1), 1, kout, f32)

    tm, steps = _pick_rows_tiling(rows, tm_target)
    row_splits = _row_splits(tm)

    # Gen-gated VMEM-resident weight budget (~40 MiB on v7x, ~100 MiB v5e/v6e).
    w_bytes = (kin * kmid + kmid * kout) * 2
    assert w_bytes <= 40 * 1024 * 1024, "weights exceed the VMEM-resident budget"
    # TODO(synk): for transformer-scale mid, switch to a K-reduction grid axis
    # with an f32 VMEM accumulator instead of asserting.

    # VMEM budget: resident weights + double-buffered x / out tiles + hidden
    # headroom; never request all of v7x's 64 MiB physical VMEM.
    xbytes = jnp.dtype(xk.dtype).itemsize
    obytes = jnp.dtype(x.dtype).itemsize
    need = (w_bytes + (kmid + kout) * 4
            + 2 * tm * kin * xbytes + 2 * tm * kout * obytes
            + min(ROW_SUB, tm) * kmid * 4)
    vmem_limit = int(min(vmem_cap_bytes, max(16 * 1024 * 1024, 2 * need)))

    resident = dict(pipeline_mode=pl.Buffered(1))   # constant-index, single buffer
    kernel = functools.partial(_mlp_kernel, row_splits=row_splits)

    out = pl.pallas_call(
        kernel,
        out_shape=jax.ShapeDtypeStruct((rows, kout), x.dtype),  # match caller dtype
        grid_spec=pltpu.PrefetchScalarGridSpec(
            num_scalar_prefetch=0,
            grid=(steps,),
            in_specs=[
                pl.BlockSpec((tm, kin), lambda i: (i, 0)),
                pl.BlockSpec((kin, kmid), lambda i: (0, 0), **resident),
                pl.BlockSpec((1, kmid), lambda i: (0, 0), **resident),
                pl.BlockSpec((kmid, kout), lambda i: (0, 0), **resident),
                pl.BlockSpec((1, kout), lambda i: (0, 0), **resident),
            ],
            out_specs=pl.BlockSpec((tm, kout), lambda i: (i, 0)),
        ),
        compiler_params=pltpu.CompilerParams(
            dimension_semantics=("parallel",),
            vmem_limit_bytes=vmem_limit,
        ),
    )(xk, w1k, b1k, w2k, b2k)

    if pack:
        out = out.reshape(rows * P, out_feat)       # free reshape (unpack tokens)
        if token_padded:
            out = out[:M]
    elif kout != out_feat:
        out = out[:, :out_feat]
    return out.reshape(*lead, out_feat)


# ------------------------------ references ----------------------------------
def mlp_reference_f32(x, w1, b1, w2, b2):
    xf = x.astype(jnp.float32)
    h = jnp.maximum(xf @ w1 + b1, 0.0)
    return h @ w2 + b2


def mlp_reference_bf16(x, w1, b1, w2, b2):
    """Same math as the kernel (bf16 MXU operands, f32 accumulation)."""
    bf16 = jnp.bfloat16
    h = jnp.dot(x.astype(bf16), w1.astype(bf16),
                preferred_element_type=jnp.float32) + b1
    h = jnp.maximum(h, 0.0)
    return jnp.dot(h.astype(bf16), w2.astype(bf16),
                   preferred_element_type=jnp.float32) + b2


def _make_params(key, in_feat, mid_feat, out_feat):
    kw1, kb1, kw2, kb2 = jax.random.split(key, 4)
    # nn.Linear-style uniform(-1/sqrt(fan_in), 1/sqrt(fan_in)); weights stored (in, out).
    bound1 = 1.0 / (in_feat ** 0.5)
    bound2 = 1.0 / (mid_feat ** 0.5)
    w1 = jax.random.uniform(kw1, (in_feat, mid_feat), jnp.float32, -bound1, bound1)
    b1 = jax.random.uniform(kb1, (mid_feat,), jnp.float32, -bound1, bound1)
    w2 = jax.random.uniform(kw2, (mid_feat, out_feat), jnp.float32, -bound2, bound2)
    b2 = jax.random.uniform(kb2, (out_feat,), jnp.float32, -bound2, bound2)
    return w1, b1, w2, b2


def _run_case(key, tokens, in_feat, mlp_ratio, x_dtype=jnp.float32):
    mid_feat = in_feat * mlp_ratio
    out_feat = in_feat
    kx, kp = jax.random.split(key)
    x = jax.random.normal(kx, (tokens, in_feat), dtype=jnp.float32).astype(x_dtype)
    w1, b1, w2, b2 = _make_params(kp, in_feat, mid_feat, out_feat)

    y = jax.block_until_ready(mlp_forward(x, w1, b1, w2, b2))
    assert y.shape == (tokens, out_feat)
    assert y.dtype == x_dtype

    yf = y.astype(jnp.float32)
    y_f32 = mlp_reference_f32(x, w1, b1, w2, b2)
    y_bf16 = mlp_reference_bf16(x, w1, b1, w2, b2)
    tol = 2e-2 if x_dtype == jnp.bfloat16 else 2e-3
    assert jnp.allclose(yf, y_f32, atol=5e-2, rtol=5e-2), "mismatch vs f32 reference"
    assert jnp.allclose(yf, y_bf16, atol=tol, rtol=tol), "mismatch vs bf16-matched reference"
    return y


if __name__ == "__main__":
    key = jax.random.PRNGKey(0)
    k1, k2, k3 = jax.random.split(key, 3)

    # Module config: in_feat=32, mlp_ratio=1 -> mid=32, out_feat=32, dropout=0.0.
    in_feat, mlp_ratio = 32, 1
    batch, seq = 2, 8                       # 16 tokens -> packed path, single block
    y = _run_case(k1, batch * seq, in_feat, mlp_ratio)
    y = y.reshape(batch, seq, in_feat)      # restore (batch, seq, feat) like nn.Linear

    # Packed path with token padding, 2-step grid, masked partial tail, bf16 I/O.
    _run_case(k2, tokens=257, in_feat=32, mlp_ratio=1, x_dtype=jnp.bfloat16)

    # Fallback (non-packable, in_feat=96) path: feature padding + masked tail.
    _run_case(k3, tokens=300, in_feat=96, mlp_ratio=2)

    print("KERNEL_OK")
</pallas_src>

<mosaic_0001>
module attributes {stable_mosaic.version = 11 : i64} {
  func.func @_mlp_kernel(%arg0: i32, %arg1: memref<4x128xf32, #tpu.memory_space<vmem>>, %arg2: memref<128x128xbf16, #tpu.memory_space<vmem>>, %arg3: memref<1x128xf32, #tpu.memory_space<vmem>>, %arg4: memref<128x128xbf16, #tpu.memory_space<vmem>>, %arg5: memref<1x128xf32, #tpu.memory_space<vmem>>, %arg6: memref<4x128xf32, #tpu.memory_space<vmem>>) attributes {dimension_semantics = [#tpu.dimension_semantics<parallel>], iteration_bounds = array<i64: 1>, scalar_prefetch = 0 : i64, scratch_operands = 0 : i64, tpu.core_type = #tpu.core_type<tc>, window_params = [{transform_indices = @transform_0, window_bounds = array<i64: 4, 128>}, {pipeline_mode = #tpu.pipeline_mode<synchronous>, transform_indices = @transform_1, window_bounds = array<i64: 128, 128>}, {pipeline_mode = #tpu.pipeline_mode<synchronous>, transform_indices = @transform_2, window_bounds = array<i64: 1, 128>}, {pipeline_mode = #tpu.pipeline_mode<synchronous>, transform_indices = @transform_3, window_bounds = array<i64: 128, 128>}, {pipeline_mode = #tpu.pipeline_mode<synchronous>, transform_indices = @transform_4, window_bounds = array<i64: 1, 128>}, {transform_indices = @transform_5, window_bounds = array<i64: 4, 128>}]} {
    %c0 = arith.constant 0 : index
    %c0_0 = arith.constant 0 : index
    %0 = vector.load %arg2[%c0, %c0_0] : memref<128x128xbf16, #tpu.memory_space<vmem>>, vector<128x128xbf16>
    %c0_1 = arith.constant 0 : index
    %c0_2 = arith.constant 0 : index
    %1 = vector.load %arg4[%c0_1, %c0_2] : memref<128x128xbf16, #tpu.memory_space<vmem>>, vector<128x128xbf16>
    %c0_3 = arith.constant 0 : index
    %c0_4 = arith.constant 0 : index
    %2 = vector.load %arg3[%c0_3, %c0_4] : memref<1x128xf32, #tpu.memory_space<vmem>>, vector<1x128xf32>
    %c0_5 = arith.constant 0 : index
    %c0_6 = arith.constant 0 : index
    %3 = vector.load %arg5[%c0_5, %c0_6] : memref<1x128xf32, #tpu.memory_space<vmem>>, vector<1x128xf32>
    %c0_7 = arith.constant 0 : index
    %c0_8 = arith.constant 0 : index
    %4 = vector.load %arg1[%c0_7, %c0_8] : memref<4x128xf32, #tpu.memory_space<vmem>>, vector<4x128xf32>
    %5 = arith.truncf %4 : vector<4x128xf32> to vector<4x128xbf16>
    %cst = arith.constant dense<0.000000e+00> : vector<4x128xf32>
    %6 = tpu.matmul %5, %0, %cst {dimension_numbers = #tpu.dot_dimension_numbers<[1], [0], [0], [1], [0, 0, 1, 1], [], []>} : vector<4x128xbf16>, vector<128x128xbf16>, vector<4x128xf32> -> vector<4x128xf32>
    %7 = vector.broadcast %2 : vector<1x128xf32> to vector<4x128xf32>
    %8 = arith.addf %6, %7 : vector<4x128xf32>
    %cst_9 = arith.constant 0.000000e+00 : f32
    %9 = vector.broadcast %cst_9 : f32 to vector<4x128xf32>
    %10 = arith.maximumf %8, %9 : vector<4x128xf32>
    %11 = arith.truncf %10 : vector<4x128xf32> to vector<4x128xbf16>
    %cst_10 = arith.constant dense<0.000000e+00> : vector<4x128xf32>
    %12 = tpu.matmul %11, %1, %cst_10 {dimension_numbers = #tpu.dot_dimension_numbers<[1], [0], [0], [1], [0, 0, 1, 1], [], []>} : vector<4x128xbf16>, vector<128x128xbf16>, vector<4x128xf32> -> vector<4x128xf32>
    %13 = vector.broadcast %3 : vector<1x128xf32> to vector<4x128xf32>
    %14 = arith.addf %12, %13 : vector<4x128xf32>
    %c0_11 = arith.constant 0 : index
    %c0_12 = arith.constant 0 : index
    %15 = vector.load %arg6[%c0_11, %c0_12] : memref<4x128xf32, #tpu.memory_space<vmem>>, vector<4x128xf32>
    tpu.vector_store %arg6[%c0_11, %c0_12], %14 {strides = array<i32>} : memref<4x128xf32, #tpu.memory_space<vmem>>, vector<4x128xf32>,
    return
  }
  func.func @transform_0(%arg0: i32) -> (i32, i32) {
    %c0_i32 = arith.constant 0 : i32
    %c0_i32_0 = arith.constant 0 : i32
    return %arg0, %c0_i32 : i32, i32
  }
  func.func @transform_1(%arg0: i32) -> (i32, i32) {
    %c0_i32 = arith.constant 0 : i32
    %c0_i32_0 = arith.constant 0 : i32
    %c0_i32_1 = arith.constant 0 : i32
    return %c0_i32, %c0_i32_0 : i32, i32
  }
  func.func @transform_2(%arg0: i32) -> (i32, i32) {
    %c0_i32 = arith.constant 0 : i32
    %c0_i32_0 = arith.constant 0 : i32
    %c0_i32_1 = arith.constant 0 : i32
    return %c0_i32, %c0_i32_0 : i32, i32
  }
  func.func @transform_3(%arg0: i32) -> (i32, i32) {
    %c0_i32 = arith.constant 0 : i32
    %c0_i32_0 = arith.constant 0 : i32
    %c0_i32_1 = arith.constant 0 : i32
    return %c0_i32, %c0_i32_0 : i32, i32
  }
  func.func @transform_4(%arg0: i32) -> (i32, i32) {
    %c0_i32 = arith.constant 0 : i32
    %c0_i32_0 = arith.constant 0 : i32
    %c0_i32_1 = arith.constant 0 : i32
    return %c0_i32, %c0_i32_0 : i32, i32
  }
  func.func @transform_5(%arg0: i32) -> (i32, i32) {
    %c0_i32 = arith.constant 0 : i32
    %c0_i32_0 = arith.constant 0 : i32
    return %arg0, %c0_i32 : i32, i32
  }
}

</mosaic_0001>

<bundles_post_ra>
// kernel: tpu_custom_call.1
= control target key start
LH: loop header
LB: loop body
LE: loop exit
PB: predicated region body
PF: predicated region fallthrough
CT: control target
= control target key end

     0   :  { %10 = vsyncpa [#allocation3], 0  ;;  %s596_s0 = inlined_call_operand.hbm [shape: f32[4,128], index: 0, kind: input, shape index: {}]   ;;  %s597_s1 = inlined_call_operand.hbm [shape: bf16[128,128], index: 1, kind: input, shape index: {}]   ;;  %s598_s2 = inlined_call_operand.vmem [shape: f32[1,128], index: 2, kind: input, shape index: {}]   ;;  %s599_s3 = inlined_call_operand.hbm [shape: bf16[128,128], index: 3, kind: input, shape index: {}]   ;;  %s600_s4 = inlined_call_operand.vmem [shape: f32[1,128], index: 4, kind: input, shape index: {}]   ;;  %s601_s5 = inlined_call_operand.hbm [shape: f32[4,128], index: 5, kind: output, shape index: {}]  }
   0x1   :  { %11 = vsyncpa [#allocation6], 0 }
   0x2   :  { %12 = vsyncpa [#allocation4], 0  ;;  %s498_s18 = smov [#allocation5]   ;;  %s404_s22 = scalar_lea.hbm %s597_s1, 1024 }
   0x3   :  { %s28_s19 = sshll.u32 %s498_s18, 4  ;;  %p405_p0 = scmp.ne.s32.totalorder %s597_s1, %s404_s22  ;;  %s29_s19 = int_to_ptr.vmem [resolvable:$true] %s28_s19 }
   0x4   :  { %p408_p1 = scmp.lt.u32.totalorder %s404_s22, %s597_s1 }
   0x6   :  { %p410_p2 = pnand %p408_p1, %p405_p0 }
   0x8   :  { %413 = shalt.err (!%p410_p2)
}
   0x9   :  { %s414_s27 = scalar_lea.vmem %s29_s19, 1024  ;;  %p419_p4 = scmp.lt.s32.totalorder %s29_s19, %s29_s19 }
   0xa   :  { %p415_p3 = scmp.ne.s32.totalorder %s29_s19, %s414_s27  ;;  %p420_p5 = scmp.lt.s32.totalorder %s414_s27, %s414_s27 }
   0xc   :  { %p421_p6 = por %p420_p5, %p419_p4 }
   0xe   :  { %p422_p7 = pnand %p421_p6, %p415_p3 }
  0x10   :  { %425 = shalt.err (!%p422_p7)
}
  0x11   :  { %s499_s28 = smov 64   ;;  %s500_s29 = smov 4  }
  0x12   :  { %34 = dma.hbm_to_vmem [thread:$0]  %s597_s1, 1024, %s29_s19, [#allocation6], %s499_s28, %s499_s28, %s500_s29  }
  0x13   :  { %s501_s7 = smov [#allocation2]   ;;  %s502_s9 = smov [#allocation7]  }
  0x14   :  { %s19_s8 = sshll.u32 %s501_s7, 4  ;;  %s42_s10 = sshll.u32 %s502_s9, 4  ;;  %s20_s8 = int_to_ptr.vmem [resolvable:$true] %s19_s8  ;;  %s43_s10 = int_to_ptr.vmem [resolvable:$true] %s42_s10 }
  0x15   :  { %s426_s13 = scalar_lea.hbm %s596_s0, 64 }
  0x16   :  { %p427_p8 = scmp.ne.s32.totalorder %s596_s0, %s426_s13  ;;  %p430_p9 = scmp.lt.u32.totalorder %s426_s13, %s596_s0 }
  0x18   :  { %p432_p10 = pnand %p430_p9, %p427_p8 }
  0x1a   :  { %435 = shalt.err (!%p432_p10)
}
  0x1b   :  { %s436_s1 = scalar_lea.vmem %s20_s8, 64  ;;  %p441_p12 = scmp.lt.s32.totalorder %s20_s8, %s20_s8 }
  0x1c   :  { %p437_p11 = scmp.ne.s32.totalorder %s20_s8, %s436_s1  ;;  %p442_p13 = scmp.lt.s32.totalorder %s436_s1, %s436_s1 }
  0x1e   :  { %p443_p0 = por %p442_p13, %p441_p12 }
  0x20   :  { %p444_p1 = pnand %p443_p0, %p437_p11 }
  0x22   :  { %447 = shalt.err (!%p444_p1)
}
  0x23   :  { %22 = dma.hbm_to_vmem [thread:$0]  %s596_s0, 64, %s20_s8, [#allocation3]  }
  0x24   :  { %s448_s22 = scalar_lea.hbm %s599_s3, 1024 }
  0x25   :  { %p449_p2 = scmp.ne.s32.totalorder %s599_s3, %s448_s22  ;;  %p452_p3 = scmp.lt.u32.totalorder %s448_s22, %s599_s3 }
  0x27   :  { %p454_p4 = pnand %p452_p3, %p449_p2 }
  0x29   :  { %457 = shalt.err (!%p454_p4)
}
  0x2a   :  { %s458_s27 = scalar_lea.vmem %s43_s10, 1024  ;;  %p463_p6 = scmp.lt.s32.totalorder %s43_s10, %s43_s10 }
  0x2b   :  { %p459_p5 = scmp.ne.s32.totalorder %s43_s10, %s458_s27  ;;  %p464_p7 = scmp.lt.s32.totalorder %s458_s27, %s458_s27 }
  0x2d   :  { %p465_p8 = por %p464_p7, %p463_p6 }
  0x2f   :  { %p466_p9 = pnand %p465_p8, %p459_p5 }
  0x31   :  { %469 = shalt.err (!%p466_p9)
}
  0x32   :  { %48 = dma.hbm_to_vmem [thread:$0]  %s599_s3, 1024, %s43_s10, [#allocation6], %s499_s28, %s499_s28, %s500_s29  }
  0x33   :  { %492 = dma.done.wait [#allocation3], 64  }
  0x34   :  { %493 = vsyncadd [#allocation3], 4294967232 }
  0x35   :  { %494 = dma.done.wait [#allocation6], 2048  }
  0x36   :  { %495 = vsyncadd [#allocation6], 4294965248  ;;  %v503_v0 = vmov 0.0   ;;  %vm504_vm0 = vmmov 0   ;;  %v388_v1 = vld [vmem:[#allocation5] sm:$0xff]   ;;  %v389_v2 = vld [vmem:[#allocation5 + $0x8] sm:$0xff]  }
  0x37   :  { %340 = vmatprep.subr.bf16.mxu0 %v503_v0  ;;  %356 = vmatprep.mubr.msk.bf16.mxu0 %vm504_vm0, %v503_v0  ;;  %v390_v3 = vld [vmem:[#allocation5 + $0x10] sm:$0xff]   ;;  %v396_v4 = vld [vmem:[#allocation7] sm:$0xff]   ;;  %v391_v5 = vld [vmem:[#allocation5 + $0x18] sm:$0xff]   ;;  %s505_s7 = smov [#allocation8]  }
  0x38   :  { %360 = vmatprep.subr.bf16.mxu1 %v503_v0  ;;  %376 = vmatprep.mubr.msk.bf16.mxu1 %vm504_vm0, %v503_v0  ;;  %v397_v6 = vld [vmem:[#allocation7 + $0x8] sm:$0xff]   ;;  %v392_v7 = vld [vmem:[#allocation5 + $0x20] sm:$0xff]   ;;  %v398_v8 = vld [vmem:[#allocation7 + $0x10] sm:$0xff]   ;;  %s294_s8 = sshll.u32 %s505_s7, 4  ;;  %s295_s8 = int_to_ptr.vmem [resolvable:$true] %s294_s8 }
  0x39   :  { %341 = vmatpush3.bf16.msra.mxu0 %v388_v1  ;;  %361 = vmatpush3.bf16.msra.mxu1 %v396_v4  ;;  %v393_v9 = vld [vmem:[#allocation5 + $0x28] sm:$0xff]   ;;  %v399_v10 = vld [vmem:[#allocation7 + $0x18] sm:$0xff]   ;;  %v394_v11 = vld [vmem:[#allocation5 + $0x30] sm:$0xff]   ;;  %p475_p11 = scmp.lt.s32.totalorder %s295_s8, %s295_s8 }
  0x3a   :  { %342 = vmatprep.subr.bf16.mxu0 %v503_v0  ;;  %362 = vmatprep.subr.bf16.mxu1 %v503_v0  ;;  %v400_v12 = vld [vmem:[#allocation7 + $0x20] sm:$0xff]   ;;  %v395_v13 = vld [vmem:[#allocation5 + $0x38] sm:$0xff]   ;;  %v401_v15 = vld [vmem:[#allocation7 + $0x28] sm:$0xff]  }
  0x3b   :  { %v95_v14 = vld [vmem:[#allocation2] sm:$0xf]  ;;  %v402_v17 = vld [vmem:[#allocation7 + $0x30] sm:$0xff]  }
  0x3c   :  { %v96_v16 = vpack.c.bf16 %v95_v14, %v95_v14  ;;  %v403_v18 = vld [vmem:[#allocation7 + $0x38] sm:$0xff]  }
  0x3d   :  { %343 = vmatpush3.bf16.msra.mxu0 %v389_v2  ;;  %363 = vmatpush3.bf16.msra.mxu1 %v397_v6  ;;  %v304_v19 = vld [vmem:[%s598_s2] ss:$0 sm:$0xff]  ;;  %s470_s2 = scalar_lea.vmem %s295_s8, 64 }
  0x3e   :  { %344 = vmatprep.subr.bf16.mxu0 %v503_v0  ;;  %364 = vmatprep.subr.bf16.mxu1 %v503_v0  ;;  %v313_v27 = vld [vmem:[%s600_s4] ss:$0 sm:$0xff]  ;;  %p471_p10 = scmp.ne.s32.totalorder %s295_s8, %s470_s2  ;;  %p476_p12 = scmp.lt.s32.totalorder %s470_s2, %s470_s2 }
  0x40   :  { %p477_p13 = por %p476_p12, %p475_p11 }
  0x41   :  { %345 = vmatpush3.bf16.msra.mxu0 %v390_v3  ;;  %365 = vmatpush3.bf16.msra.mxu1 %v398_v8 }
  0x42   :  { %346 = vmatprep.subr.bf16.mxu0 %v503_v0  ;;  %366 = vmatprep.subr.bf16.mxu1 %v503_v0  ;;  %p478_p0 = pnand %p477_p13, %p471_p10 }
  0x45   :  { %347 = vmatpush3.bf16.msra.mxu0 %v391_v5  ;;  %367 = vmatpush3.bf16.msra.mxu1 %v399_v10 }
  0x46   :  { %348 = vmatprep.subr.bf16.mxu0 %v503_v0  ;;  %368 = vmatprep.subr.bf16.mxu1 %v503_v0 }
  0x49   :  { %349 = vmatpush3.bf16.msra.mxu0 %v392_v7  ;;  %369 = vmatpush3.bf16.msra.mxu1 %v400_v12 }
  0x4a   :  { %350 = vmatprep.subr.bf16.mxu0 %v503_v0  ;;  %370 = vmatprep.subr.bf16.mxu1 %v503_v0 }
  0x4d   :  { %351 = vmatpush3.bf16.msra.mxu0 %v393_v9  ;;  %371 = vmatpush3.bf16.msra.mxu1 %v401_v15 }
  0x4e   :  { %352 = vmatprep.subr.bf16.mxu0 %v503_v0  ;;  %372 = vmatprep.subr.bf16.mxu1 %v503_v0 }
  0x51   :  { %353 = vmatpush3.bf16.msra.mxu0 %v394_v11  ;;  %373 = vmatpush3.bf16.msra.mxu1 %v402_v17 }
  0x52   :  { %354 = vmatprep.subr.bf16.mxu0 %v503_v0  ;;  %374 = vmatprep.subr.bf16.mxu1 %v503_v0 }
  0x55   :  { %355 = vmatpush3.bf16.msra.mxu0 %v395_v13  ;;  %375 = vmatpush3.bf16.msra.mxu1 %v403_v18 }
  0x58   :  { %357 = vmatmul.mubr.bf16.vlgmr.msra.gmra.mrb[0].mxu0 %v96_v16 }
 0x12b   :  { %v185_v20 = vpop.f32.mrb[0].mxu0 }
 0x12c   :  { %v186_v21 = vadd.f32 %v304_v19, %v185_v20  ;;  %v358_v22 = vpop.f32.mrb[1].mxu0 }
 0x12d   :  { %v188_v23 = vpop.f32.mrb[2].mxu0 }
 0x12e   :  { %v191_v24 = vmax.f32 %v186_v21, 0.0  ;;  %v359_v25 = vpop.f32.mrb[3].mxu0 }
 0x130   :  { %v192_v26 = vpack.c.bf16 %v191_v24, %v191_v24 }
 0x132   :  { %377 = vmatmul.mubr.bf16.vlgmr.msra.gmra.mrb[0].mxu1 %v192_v26 }
 0x205   :  { %v281_v28 = vpop.f32.mrb[0].mxu1 }
 0x206   :  { %v282_v29 = vadd.f32 %v313_v27, %v281_v28  ;;  %v378_v30 = vpop.f32.mrb[1].mxu1 }
 0x207   :  { %v284_v31 = vpop.f32.mrb[2].mxu1 }
 0x208   :  { %287 = vst [vmem:[#allocation8] sm:$0xf] %v282_v29  ;;  %v379_v32 = vpop.f32.mrb[3].mxu1 }
 0x209   :  { %481 = shalt.err (!%p478_p0)
}
 0x20a   :  { %s482_s4 = scalar_lea.hbm %s601_s5, 64 }
 0x20b   :  { %p483_p1 = scmp.ne.s32.totalorder %s601_s5, %s482_s4  ;;  %p486_p2 = scmp.lt.u32.totalorder %s482_s4, %s601_s5 }
 0x20d   :  { %p488_p3 = pnand %p486_p2, %p483_p1 }
 0x20f   :  { %491 = shalt.err (!%p488_p3)
}
 0x210   :  { %297 = dma.vmem_to_hbm [thread:$0]  %s295_s8, 64, %s601_s5, [#allocation4]  }
 0x211   :  { %496 = dma.done.wait [#allocation4], 64  }
 0x212   :  { %497 = vsyncadd [#allocation4], 4294967232 }
 0x213   :  { %301 = vsyncpa [#allocation3], 1 }
 0x214   :  { %302 = vsyncpa [#allocation6], 1 }
 0x215   :  { %303 = vsyncpa [#allocation4], 1 }

</bundles_post_ra>
